<compile_context>
chip_gen: v7x
topology: tpu7x:2x2x1
jax: 0.10.0
libtpu: 0.0.40
codegen_flags: <defaults>
</compile_context>

<pallas_src>
import jax
import jax.numpy as jnp
from jax.experimental import pallas as pl
from jax.experimental.pallas import tpu as pltpu

# Hyper-parameters (from args in the PyTorch module __init__) — compile-time
# constants, typical ASL settings.
G_POS = 0.0
G_NEG = 4.0
MARGIN = 0.05
EPS = 1e-8


def _cdiv(a, b):
    return (a + b - 1) // b


def _round_up(a, b):
    return _cdiv(a, b) * b


def _tpu_info():
    try:
        return pltpu.get_tpu_info()
    except Exception:
        return None


def _tpu_vmem_capacity_bytes():
    info = _tpu_info()
    if info is not None:
        v = getattr(info, "vmem_capacity_bytes", None)
        try:
            if v:
                return int(v)
        except (TypeError, ValueError):
            pass
    return 64 << 20  # conservative default: v7x per-TensorCore VMEM


def _tpu_core_count():
    info = _tpu_info()
    if info is not None:
        for name in ("num_cores", "num_cores_per_chip", "cores_per_chip",
                     "core_count", "num_tensorcores"):
            v = getattr(info, name, None)
            try:
                iv = int(v)
            except (TypeError, ValueError):
                continue
            if iv >= 1:
                return iv
    return 1  # safe default: v5e/v6e have a single TensorCore per chip


def _const_pow(v, g):
    """v ** g for a compile-time exponent g.  Small non-negative integer
    exponents use exact multiply chains (VPU only, and pow(0,0)==1 like
    torch); otherwise fall back to jnp.power (EUP exp/log)."""
    gi = int(g)
    if float(gi) == float(g) and 0 <= gi <= 64:
        if gi == 0:
            return 1.0
        result = None
        base = v
        while gi:
            if gi & 1:
                result = base if result is None else result * base
            gi >>= 1
            if gi:
                base = base * base
        return result
    return jnp.power(v, jnp.float32(g))


def asl_loss(x, y, *, vmem_budget_bytes=None, num_cores=None):
    """Pallas implementation of ASLloss.forward(x, y) -> scalar (float32).

    x: (N, C) probabilities (sigmoid already applied), float32 or bfloat16.
    y: (N, C) binary multi-label targets; any dtype (bf16/int8 recommended
       to cut y's HBM traffic).
    """
    N, C = x.shape
    assert y.shape == (N, C), (x.shape, y.shape)
    T = N * C

    # --- lane-dense view: flatten to (R, 128) when possible (free reshape),
    # otherwise keep (N, C) with full-C (possibly lane-padded) blocks.
    if T % 128 == 0:
        R, L = T // 128, 128
        xv = x.reshape(R, L)
        yv = y.reshape(R, L)
    else:
        R, L = N, C
        xv, yv = x, y

    x_b = xv.dtype.itemsize
    y_b = yv.dtype.itemsize

    cap = _tpu_vmem_capacity_bytes()
    if vmem_budget_bytes is None:
        # per-generation tile budget: never more than a third of physical VMEM
        vmem_budget_bytes = min(24 << 20, cap // 3)
    if num_cores is None:
        num_cores = _tpu_core_count()

    # sublane-packing minimum for the tile's second-minor dim (f32:8, bf16:16, int8:32)
    sub_mult = max(8, 32 // x_b, 32 // y_b)

    # --- row-tile size: double-buffered x & y tiles within the VMEM budget
    # (the (8, L) f32 output block + its second buffer are accounted below).
    row_bytes = L * 2 * (x_b + y_b)
    max_rows = max(sub_mult,
                   (int(vmem_budget_bytes) // row_bytes) // sub_mult * sub_mult)

    block_r = max_rows
    if num_cores > 1 and R >= 2 * sub_mult:
        # make sure there are at least `num_cores` row tiles to shard
        block_r = min(block_r, _round_up(_cdiv(R, num_cores), sub_mult))
    if block_r >= R:
        block_r = R  # single block along rows (full-dim block: any size allowed)

    # per-step partial reduction of the (block_r, L) loss tile down to (8, L)
    reduce_rows = (block_r > 8) and (block_r % 8 == 0)
    acc_rows = 8 if reduce_rows else block_r

    nblocks = _cdiv(R, block_r)
    num_par = num_cores if (num_cores > 1 and nblocks >= num_cores) else 1
    steps = _cdiv(nblocks, num_par)
    # Row mask needed whenever the grid covers more rows than R (tail tile or
    # extra fully-masked tiles from the parallel split; OOB/padded block rows
    # are zeroed here, and the select also kills any NaN from padded garbage).
    needs_row_mask = (num_par * steps * block_r) != R

    # --- explicit VMEM limit: actual footprint (inputs + output, both double
    # buffered) + headroom, capped below the physical per-core capacity.
    footprint = 2 * block_r * L * (x_b + y_b) + 2 * acc_rows * L * 4
    vmem_limit = max(footprint + (4 << 20), 16 << 20)
    vmem_limit = int(min(vmem_limit, max(cap - (8 << 20), 16 << 20)))

    if num_par > 1 and hasattr(pltpu, "CORE_PARALLEL"):
        # guarantee a real multi-TensorCore split of the outer grid axis
        dim_sem = (pltpu.CORE_PARALLEL, pltpu.ARBITRARY)
    else:
        dim_sem = ("parallel", "arbitrary")

    def kernel(x_ref, y_ref, out_ref):
        # Output block index is constant along the inner (reduction) axis ->
        # it stays resident in VMEM as an accumulator; init on first step.
        @pl.when(pl.program_id(1) == 0)
        def _():
            out_ref[...] = jnp.zeros_like(out_ref)

        x_t = x_ref[...].astype(jnp.float32)   # sigmoid probabilities
        is_pos = y_ref[...] > 0                # binary multi-label targets

        # t = 1 - x_neg = max(x - margin, 0);  x_neg = clamp(1 - x + margin, max=1)
        t = jnp.maximum(x_t - MARGIN, 0.0)
        x_neg = 1.0 - t

        # Binary y:  y*log(clamp(x)) + (1-y)*log(clamp(x_neg))
        #         == log(clamp(where(y>0, x, x_neg)))  -> one log / element.
        log_term = jnp.log(jnp.maximum(jnp.where(is_pos, x_t, x_neg), EPS))

        # focus = (1 - x*y - x_neg*(1-y)) ** (g_pos*y + g_neg*(1-y)); for
        # binary y with compile-time exponents this is a select between two
        # exact integer powers (pure VPU, no exp/log, no pow(0,0) NaN).
        focus = jnp.where(is_pos,
                          _const_pow(1.0 - x_t, G_POS),
                          _const_pow(t, G_NEG))

        loss = log_term * focus

        if needs_row_mask:
            base = (pl.program_id(0) * steps + pl.program_id(1)) * block_r
            row = base + jax.lax.broadcasted_iota(jnp.int32, (block_r, 1), 0)
            loss = jnp.where(row < R, loss, 0.0)

        if reduce_rows:
            # layout-safe: (block_r, L) -> (block_r//8, 8, L) splits rows on
            # exact vreg-tile boundaries; the leading-axis sum is a VPU add
            # chain of (8, L) slabs (no XLU, no relayout).
            loss = jnp.sum(loss.reshape(block_r // 8, 8, L), axis=0)

        out_ref[...] += loss

    out = pl.pallas_call(
        kernel,
        out_shape=jax.ShapeDtypeStruct((num_par * acc_rows, L), jnp.float32),
        grid_spec=pltpu.PrefetchScalarGridSpec(
            num_scalar_prefetch=0,
            grid=(num_par, steps),
            in_specs=[
                pl.BlockSpec((block_r, L), lambda p, s: (p * steps + s, 0)),
                pl.BlockSpec((block_r, L), lambda p, s: (p * steps + s, 0)),
            ],
            out_specs=pl.BlockSpec((acc_rows, L), lambda p, s: (p, 0)),
        ),
        compiler_params=pltpu.CompilerParams(
            dimension_semantics=dim_sem,
            vmem_limit_bytes=vmem_limit),
    )(xv, yv)

    # Tiny finalize (XLA): sum the per-core (8, L) partials and negate.
    return -jnp.sum(out)


def asl_loss_ref(x, y):
    """Pure-JAX reference mirroring the PyTorch forward exactly."""
    x = x.astype(jnp.float32)
    y = y.astype(jnp.float32)
    x_pos = x
    x_neg = jnp.minimum((1.0 - x) + MARGIN, 1.0)
    los_pos = y * jnp.log(jnp.maximum(x_pos, EPS))
    los_neg = (1.0 - y) * jnp.log(jnp.maximum(x_neg, EPS))
    loss = los_pos + los_neg
    xp = x_pos * y
    xn = x_neg * (1.0 - y)
    focus = jnp.power(1.0 - xp - xn, G_POS * y + G_NEG * (1.0 - y))
    return -jnp.sum(loss * focus)


if __name__ == "__main__":
    key = jax.random.PRNGKey(0)

    def make_case(k, n, c, y_dtype):
        k1, k2 = jax.random.split(k)
        logits = jax.random.normal(k1, (n, c), dtype=jnp.float32)
        xx = jax.nn.sigmoid(logits)          # module expects sigmoided inputs
        yy = (jax.random.uniform(k2, (n, c)) > 0.7).astype(y_dtype)
        return xx, yy

    cases = []
    # (1) small lane-dense case: flattened (R, 128) path, single tile
    key, sk = jax.random.split(key)
    cases.append((make_case(sk, 16, 128, jnp.bfloat16), {}))
    # (2) C not a multiple of 128 and N*C % 128 != 0: full-(N, C)-block fallback
    key, sk = jax.random.split(key)
    cases.append((make_case(sk, 10, 40, jnp.float32), {}))
    # (3) multi-step path with a masked tail tile (tiny VMEM budget forces tiling)
    key, sk = jax.random.split(key)
    cases.append((make_case(sk, 300, 128, jnp.bfloat16),
                  dict(vmem_budget_bytes=100_000)))

    for (x, y), kwargs in cases:
        out = jax.block_until_ready(asl_loss(x, y, **kwargs))
        ref = asl_loss_ref(x, y)
        assert jnp.allclose(out, ref, rtol=1e-4, atol=1e-3), (x.shape, out, ref)

    # TODO(synk): the PyTorch module also stashes intermediates on `self`
    # (self.loss, self.focus_loss, ...); only the returned scalar is computed.
    print("KERNEL_OK")
</pallas_src>

<mosaic_0001>
module attributes {stable_mosaic.version = 11 : i64} {
  func.func @kernel(%arg0: i32, %arg1: i32, %arg2: memref<16x128xf32, #tpu.memory_space<vmem>>, %arg3: memref<16x128xbf16, #tpu.memory_space<vmem>>, %arg4: memref<8x128xf32, #tpu.memory_space<vmem>>) attributes {dimension_semantics = [#tpu.dimension_semantics<parallel>, #tpu.dimension_semantics<arbitrary>], iteration_bounds = array<i64: 1, 1>, scalar_prefetch = 0 : i64, scratch_operands = 0 : i64, tpu.core_type = #tpu.core_type<tc>, window_params = [{transform_indices = @transform_0, window_bounds = array<i64: 16, 128>}, {transform_indices = @transform_1, window_bounds = array<i64: 16, 128>}, {transform_indices = @transform_2, window_bounds = array<i64: 8, 128>}]} {
    %c0_i32 = arith.constant 0 : i32
    %0 = arith.cmpi eq, %arg1, %c0_i32 : i32
    %1 = arith.extui %0 : i1 to i32
    %c0_i32_0 = arith.constant 0 : i32
    %2 = arith.cmpi ne, %1, %c0_i32_0 : i32
    scf.if %2 {
      %cst_14 = arith.constant 0.000000e+00 : f32
      %27 = vector.broadcast %cst_14 : f32 to vector<8x128xf32>
      %c0_15 = arith.constant 0 : index
      %c0_16 = arith.constant 0 : index
      %28 = vector.load %arg4[%c0_15, %c0_16] : memref<8x128xf32, #tpu.memory_space<vmem>>, vector<8x128xf32>
      tpu.vector_store %arg4[%c0_15, %c0_16], %27 {strides = array<i32>} : memref<8x128xf32, #tpu.memory_space<vmem>>, vector<8x128xf32>,
    } else {
    }
    %c0 = arith.constant 0 : index
    %c0_1 = arith.constant 0 : index
    %3 = vector.load %arg2[%c0, %c0_1] : memref<16x128xf32, #tpu.memory_space<vmem>>, vector<16x128xf32>
    %c0_2 = arith.constant 0 : index
    %c0_3 = arith.constant 0 : index
    %4 = vector.load %arg3[%c0_2, %c0_3] : memref<16x128xbf16, #tpu.memory_space<vmem>>, vector<16x128xbf16>
    %cst = arith.constant 0.000000e+00 : bf16
    %5 = vector.broadcast %cst : bf16 to vector<16x128xbf16>
    %6 = arith.cmpf ogt, %4, %5 : vector<16x128xbf16>
    %cst_4 = arith.constant 5.000000e-02 : f32
    %7 = vector.broadcast %cst_4 : f32 to vector<16x128xf32>
    %8 = arith.subf %3, %7 : vector<16x128xf32>
    %cst_5 = arith.constant 0.000000e+00 : f32
    %9 = vector.broadcast %cst_5 : f32 to vector<16x128xf32>
    %10 = arith.maximumf %8, %9 : vector<16x128xf32>
    %cst_6 = arith.constant 1.000000e+00 : f32
    %11 = vector.broadcast %cst_6 : f32 to vector<16x128xf32>
    %12 = arith.subf %11, %10 : vector<16x128xf32>
    %13 = arith.select %6, %3, %12 : vector<16x128xi1>, vector<16x128xf32>
    %cst_7 = arith.constant 9.99999993E-9 : f32
    %14 = vector.broadcast %cst_7 : f32 to vector<16x128xf32>
    %15 = arith.maximumf %13, %14 : vector<16x128xf32>
    %16 = math.log %15 : vector<16x128xf32>
    %17 = arith.mulf %10, %10 : vector<16x128xf32>
    %18 = arith.mulf %17, %17 : vector<16x128xf32>
    %cst_8 = arith.constant 1.000000e+00 : f32
    %19 = vector.broadcast %cst_8 : f32 to vector<16x128xf32>
    %20 = arith.select %6, %19, %18 : vector<16x128xi1>, vector<16x128xf32>
    %21 = arith.mulf %16, %20 : vector<16x128xf32>
    %22 = vector.shape_cast %21 : vector<16x128xf32> to vector<2x8x128xf32>
    %cst_9 = arith.constant dense<0.000000e+00> : vector<8x128xf32>
    %23 = vector.multi_reduction <add>, %22, %cst_9 [0] : vector<2x8x128xf32> to vector<8x128xf32>
    %c0_10 = arith.constant 0 : index
    %c0_11 = arith.constant 0 : index
    %24 = vector.load %arg4[%c0_10, %c0_11] : memref<8x128xf32, #tpu.memory_space<vmem>>, vector<8x128xf32>
    %25 = arith.addf %24, %23 : vector<8x128xf32>
    %c0_12 = arith.constant 0 : index
    %c0_13 = arith.constant 0 : index
    %26 = vector.load %arg4[%c0_12, %c0_13] : memref<8x128xf32, #tpu.memory_space<vmem>>, vector<8x128xf32>
    tpu.vector_store %arg4[%c0_12, %c0_13], %25 {strides = array<i32>} : memref<8x128xf32, #tpu.memory_space<vmem>>, vector<8x128xf32>,
    return
  }
  func.func @transform_0(%arg0: i32, %arg1: i32) -> (i32, i32) {
    %c1_i32 = arith.constant 1 : i32
    %0 = arith.muli %arg0, %c1_i32 : i32
    %1 = arith.addi %0, %arg1 : i32
    %c0_i32 = arith.constant 0 : i32
    %c0_i32_0 = arith.constant 0 : i32
    return %1, %c0_i32 : i32, i32
  }
  func.func @transform_1(%arg0: i32, %arg1: i32) -> (i32, i32) {
    %c1_i32 = arith.constant 1 : i32
    %0 = arith.muli %arg0, %c1_i32 : i32
    %1 = arith.addi %0, %arg1 : i32
    %c0_i32 = arith.constant 0 : i32
    %c0_i32_0 = arith.constant 0 : i32
    return %1, %c0_i32 : i32, i32
  }
  func.func @transform_2(%arg0: i32, %arg1: i32) -> (i32, i32) {
    %c0_i32 = arith.constant 0 : i32
    %c0_i32_0 = arith.constant 0 : i32
    return %arg0, %c0_i32 : i32, i32
  }
}

</mosaic_0001>

<bundles_post_ra>
// kernel: tpu_custom_call.1
= control target key start
LH: loop header
LB: loop body
LE: loop exit
PB: predicated region body
PF: predicated region fallthrough
CT: control target
= control target key end

     0   :  { %7 = vsyncpa [#allocation3], 0  ;;  %s276_s0 = inlined_call_operand.hbm [shape: f32[16,128], index: 0, kind: input, shape index: {}]   ;;  %s277_s1 = inlined_call_operand.hbm [shape: bf16[16,128], index: 1, kind: input, shape index: {}]   ;;  %s278_s2 = inlined_call_operand.hbm [shape: f32[8,128], index: 2, kind: output, shape index: {}]  }
   0x1   :  { %8 = vsyncpa [#allocation6], 0 }
   0x2   :  { %9 = vsyncpa [#allocation4], 0  ;;  %s201_s9 = smov [#allocation2]   ;;  %s129_s13 = scalar_lea.hbm %s276_s0, 256 }
   0x3   :  { %s19_s10 = sshll.u32 %s201_s9, 4  ;;  %p130_p0 = scmp.ne.s32.totalorder %s276_s0, %s129_s13  ;;  %s20_s10 = int_to_ptr.vmem [resolvable:$true] %s19_s10 }
   0x4   :  { %p133_p1 = scmp.lt.u32.totalorder %s129_s13, %s276_s0 }
   0x6   :  { %p135_p2 = pnand %p133_p1, %p130_p0 }
   0x8   :  { %138 = shalt.err (!%p135_p2)
}
   0x9   :  { %s139_s18 = scalar_lea.vmem %s20_s10, 256  ;;  %p144_p4 = scmp.lt.s32.totalorder %s20_s10, %s20_s10 }
   0xa   :  { %p140_p3 = scmp.ne.s32.totalorder %s20_s10, %s139_s18  ;;  %p145_p5 = scmp.lt.s32.totalorder %s139_s18, %s139_s18 }
   0xc   :  { %p146_p6 = por %p145_p5, %p144_p4 }
   0xe   :  { %p147_p7 = pnand %p146_p6, %p140_p3 }
  0x10   :  { %150 = shalt.err (!%p147_p7)
}
  0x11   :  { %s202_s19 = smov 128   ;;  %s203_s20 = smov 8  }
  0x12   :  { %25 = dma.hbm_to_vmem [thread:$0]  %s276_s0, 256, %s20_s10, [#allocation3], %s202_s19, %s202_s19, %s203_s20  }
  0x13   :  { %s204_s23 = smov [#allocation5]   ;;  %s151_s27 = scalar_lea.hbm %s277_s1, 128 }
  0x14   :  { %s35_s24 = sshll.u32 %s204_s23, 4  ;;  %p152_p8 = scmp.ne.s32.totalorder %s277_s1, %s151_s27  ;;  %s36_s24 = int_to_ptr.vmem [resolvable:$true] %s35_s24 }
  0x15   :  { %p155_p9 = scmp.lt.u32.totalorder %s151_s27, %s277_s1 }
  0x17   :  { %p157_p10 = pnand %p155_p9, %p152_p8 }
  0x19   :  { %160 = shalt.err (!%p157_p10)
}
  0x1a   :  { %s161_s4 = scalar_lea.vmem %s36_s24, 128  ;;  %p166_p12 = scmp.lt.s32.totalorder %s36_s24, %s36_s24 }
  0x1b   :  { %p162_p11 = scmp.ne.s32.totalorder %s36_s24, %s161_s4  ;;  %p167_p13 = scmp.lt.s32.totalorder %s161_s4, %s161_s4 }
  0x1d   :  { %p168_p0 = por %p167_p13, %p166_p12 }
  0x1f   :  { %p169_p1 = pnand %p168_p0, %p162_p11 }
  0x21   :  { %172 = shalt.err (!%p169_p1)
}
  0x22   :  { %s205_s0 = smov 64   ;;  %s206_s5 = smov 4  }
  0x23   :  { %41 = dma.hbm_to_vmem [thread:$0]  %s277_s1, 128, %s36_s24, [#allocation6], %s205_s0, %s205_s0, %s206_s5  }
  0x24   :  { %195 = dma.done.wait [#allocation3], 256  }
  0x25   :  { %196 = vsyncadd [#allocation3], 4294967040 }
  0x26   :  { %197 = dma.done.wait [#allocation6], 128  }
  0x27   :  { %198 = vsyncadd [#allocation6], 4294967168  ;;  %v60_v0 = vld [vmem:[#allocation2] sm:$0xff]  ;;  %v61_v1 = vld [vmem:[#allocation2 + $0x8] sm:$0xff]  ;;  %v207_v6 = vmov 0   ;;  %s208_s1 = smov [#allocation7]  }
  0x28   :  { %v62_v2 = vld [vmem:[#allocation5] sm:$0xf]  ;;  %v63_v3 = vld [vmem:[#allocation5 + $0x4] sm:$0xf]  ;;  %v114_v4 = vadd.f32 -0.05, %v60_v0 }
  0x29   :  { %vm64_vm0 = vcmp.gt.bf16.partialorder %v62_v2, 0  ;;  %vm65_vm1 = vcmp.gt.bf16.partialorder %v63_v3, 0  ;;  %v115_v5 = vadd.f32 -0.05, %v61_v1  ;;  %s104_s8 = sshll.u32 %s208_s1, 4  ;;  %s105_s8 = int_to_ptr.vmem [resolvable:$true] %s104_s8 }
  0x2a   :  { %v72_v7 = vsel %vm64_vm0, 65537, %v207_v6  ;;  %v68_v8 = vmax.f32 %v114_v4, 0.0  ;;  %v73_v9 = vsel %vm65_vm1, 65537, %v207_v6  ;;  %s173_s9 = scalar_lea.vmem %s105_s8, 128  ;;  %p178_p3 = scmp.lt.s32.totalorder %s105_s8, %s105_s8 }
  0x2b   :  { %v74_v10 = vunpack.c.l.b16 %v72_v7  ;;  %v69_v11 = vmax.f32 %v115_v5, 0.0  ;;  %v75_v12 = vunpack.c.l.b16 %v73_v9  ;;  %p174_p2 = scmp.ne.s32.totalorder %s105_s8, %s173_s9  ;;  %p179_p4 = scmp.lt.s32.totalorder %s173_s9, %s173_s9 }
  0x2c   :  { %v70_v13 = vsub.f32 1.0, %v68_v8  ;;  %v86_v21 = vmul.f32 %v68_v8, %v68_v8 }
  0x2d   :  { %vm248_vm2 = vcmp.ne.s32.totalorder %v74_v10, 0  ;;  %v71_v15 = vsub.f32 1.0, %v69_v11  ;;  %vm252_vm3 = vcmp.ne.s32.totalorder %v75_v12, 0  ;;  %v87_v22 = vmul.f32 %v69_v11, %v69_v11  ;;  %p180_p5 = por %p179_p4, %p178_p3 }
  0x2e   :  { %v78_v17 = vsel %vm248_vm2, %v60_v0, %v70_v13  ;;  %v88_v23 = vmul.f32 %v86_v21, %v86_v21 }
  0x2f   :  { %v79_v18 = vsel %vm252_vm3, %v61_v1, %v71_v15  ;;  %v80_v19 = vmax.f32 %v78_v17, 1e-08  ;;  %v89_v24 = vmul.f32 %v87_v22, %v87_v22  ;;  %p181_p6 = pnand %p180_p5, %p174_p2 }
  0x30   :  { %v81_v20 = vmax.f32 %v79_v18, 1e-08  ;;  %v90_v26 = vsel %vm248_vm2, 1.0, %v88_v23 }
  0x31   :  { %125 = vlog2.f32 %v80_v19  ;;  %v91_v29 = vsel %vm252_vm3, 1.0, %v89_v24 }
  0x32   :  { %127 = vlog2.f32 %v81_v20 }
  0x3b   :  { %v126_v25 = vpop.eup %125 }
  0x3c   :  { %v128_v27 = vpop.eup %127  ;;  %v83_v28 = vmul.f32 0.6931472, %v126_v25 }
  0x3d   :  { %v85_v30 = vmul.f32 0.6931472, %v128_v27 }
  0x3e   :  { %v92_v31 = vmul.f32 %v90_v26, %v83_v28 }
  0x3f   :  { %v93_v32 = vmul.f32 %v91_v29, %v85_v30 }
  0x41   :  { %v94_v33 = vadd.f32 %v93_v32, %v92_v31 }
  0x43   :  { %97 = vst [vmem:[#allocation7] sm:$0xff] %v94_v33 }
  0x44   :  { %184 = shalt.err (!%p181_p6)
}
  0x45   :  { %s185_s12 = scalar_lea.hbm %s278_s2, 128 }
  0x46   :  { %p186_p7 = scmp.ne.s32.totalorder %s278_s2, %s185_s12  ;;  %p189_p8 = scmp.lt.u32.totalorder %s185_s12, %s278_s2 }
  0x48   :  { %p191_p9 = pnand %p189_p8, %p186_p7 }
  0x4a   :  { %194 = shalt.err (!%p191_p9)
}
  0x4b   :  { %107 = dma.vmem_to_hbm [thread:$0]  %s105_s8, 128, %s278_s2, [#allocation4]  }
  0x4c   :  { %199 = dma.done.wait [#allocation4], 128  }
  0x4d   :  { %200 = vsyncadd [#allocation4], 4294967168 }
  0x4e   :  { %111 = vsyncpa [#allocation3], 1 }
  0x4f   :  { %112 = vsyncpa [#allocation6], 1 }
  0x50   :  { %113 = vsyncpa [#allocation4], 1 }

</bundles_post_ra>
